<compile_context>
chip_gen: v5e
topology: v5e:2x2
jax: 0.10.0
libtpu: 0.0.40
codegen_flags: <defaults>
</compile_context>

<pallas_src>
import jax
import jax.numpy as jnp
from jax.experimental import pallas as pl
from jax.experimental.pallas import tpu as pltpu


def _round_up(x, m):
    return ((x + m - 1) // m) * m


def mlp_block_kernel(x_ref, w1_ref, b1_ref, w2_ref, b2_ref, o_ref, acc_ref):
    k = pl.program_id(2)

    @pl.when(k == 0)
    def _init():
        acc_ref[...] = jnp.zeros_like(acc_ref)

    # First linear over this middle-dim chunk: (tm, D) @ (D, tk), f32 accumulation.
    # Operands stay in their native dtype (bf16 feeds the MXU directly).
    h = jnp.dot(x_ref[...], w1_ref[...], preferred_element_type=jnp.float32)
    h = h + b1_ref[...].astype(jnp.float32)

    # Exact erf GELU in f32 (matches torch.nn.GELU() default).  Padded middle columns see
    # b1 == 0 and GELU(0) == 0, so they contribute exactly zero to the second matmul.
    # TODO(synk): switch to tanh-approx GELU (EUP slot) if profiling shows VALU-bound on
    # v6e/v7x and bit-parity with torch is not required.
    h = 0.5 * h * (1.0 + jax.lax.erf(h * jnp.float32(0.7071067811865476)))

    # TODO(synk): Dropout skipped (inference/identity); training-mode dropout would use
    # pltpu.prng_seed + pltpu.prng_random_bits to build a keep-mask.

    # Second linear, partial contraction over this middle-dim chunk: (tm, tk) @ (tk, tn),
    # accumulated in f32 scratch.  h cast to the weight dtype -> bf16 MXU path when the
    # deployment is bf16.
    acc_ref[...] += jnp.dot(h.astype(w2_ref.dtype), w2_ref[...],
                            preferred_element_type=jnp.float32)

    @pl.when(k == pl.num_programs(2) - 1)
    def _finalize():
        o_ref[...] = (acc_ref[...] + b2_ref[...].astype(jnp.float32)).astype(o_ref.dtype)


def mlp_block(x, w1, b1, w2, b2, *, tm=None, use_bf16_matmul=False):
    """Fused MLPBlock forward.

    x:  (B, input_dim)
    w1: (input_dim, middle_dim),  b1: (1, middle_dim)
    w2: (middle_dim, output_dim), b2: (1, output_dim)
    """
    B, D = x.shape
    Dm, Do = w2.shape
    assert w1.shape == (D, Dm) and b1.shape == (1, Dm) and b2.shape == (1, Do)

    out_dtype = x.dtype

    if use_bf16_matmul:
        # Halves weight HBM traffic and uses the fast bf16 MXU path; the kernel keeps an
        # f32 accumulator.  Off by default to preserve f32 parity with torch.
        x, w1, w2 = (a.astype(jnp.bfloat16) for a in (x, w1, w2))

    x_isz = jnp.dtype(x.dtype).itemsize
    w_isz = jnp.dtype(w1.dtype).itemsize

    # --- Middle (reduction) dim: pad to an MXU-friendly multiple, stream in tk chunks. ---
    if Dm <= 512:
        Dm_pad = _round_up(Dm, 128)
        tk = Dm_pad
    else:
        Dm_pad = _round_up(Dm, 256)
        tk = 512 if Dm_pad % 512 == 0 else 256

    # --- Output dim: pad to lane-dense multiple of 128 and tile it (bounds VMEM). -------
    Do_pad = _round_up(Do, 128)
    if Do_pad <= 2048:
        tn = Do_pad
    else:
        tn = next(c for c in (1024, 512, 256, 128) if Do_pad % c == 0)

    if Dm_pad != Dm:
        w1 = jnp.pad(w1, ((0, 0), (0, Dm_pad - Dm)))
        b1 = jnp.pad(b1, ((0, 0), (0, Dm_pad - Dm)))   # zeros: GELU(0) == 0
        w2 = jnp.pad(w2, ((0, Dm_pad - Dm), (0, 0)))
    if Do_pad != Do:
        w2 = jnp.pad(w2, ((0, 0), (0, Do_pad - Do)))
        b2 = jnp.pad(b2, ((0, 0), (0, Do_pad - Do)))

    # --- Generation-aware VMEM budget (64 MiB on v7x, 128 MiB on v5e/v6e). --------------
    try:
        vmem_cap = int(pltpu.get_tpu_info().vmem_capacity_bytes)
    except Exception:
        vmem_cap = 64 << 20                             # conservative (v7x) fallback
    budget = int(0.8 * vmem_cap)

    def tile_bytes(tm_, tk_, tn_):
        # Count double-buffering on every pipelined operand; f32 accumulator is single.
        return (2 * tm_ * D * x_isz          # x tile
                + 2 * D * tk_ * w_isz        # w1 chunk
                + 2 * tk_ * w_isz            # b1 chunk
                + 2 * tk_ * tn_ * w_isz      # w2 chunk
                + 2 * tn_ * w_isz            # b2 tile
                + 2 * tm_ * tn_ * x_isz      # out tile
                + tm_ * tn_ * 4)             # f32 accumulator

    # --- Batch tile: as large as fits.  Weights are re-streamed per batch tile, so large
    # tm is the main arithmetic-intensity lever. --------------------------------------
    if tm is None:
        tm = B if B <= 512 else 512
    while tile_bytes(tm, tk, tn) > budget and tm > 8:
        nxt = (tm // 2) // 8 * 8
        tm = nxt if nxt >= 8 else 8
    while tile_bytes(tm, tk, tn) > budget and tk > 128 and Dm_pad % (tk // 2) == 0:
        tk //= 2
    while tile_bytes(tm, tk, tn) > budget and tn > 128 and Do_pad % (tn // 2) == 0:
        tn //= 2

    grid_i = pl.cdiv(B, tm)
    grid_j = Do_pad // tn
    grid_k = Dm_pad // tk
    grid = (grid_i, grid_j, grid_k)

    vmem_limit = int(min(budget, max(32 << 20, tile_bytes(tm, tk, tn) + (6 << 20))))

    # Cost estimate that accounts for first-GEMM recompute per output tile and weight
    # re-streaming across batch/output tiles.
    flops = 2 * B * D * Dm_pad * grid_j + 2 * B * Dm_pad * Do_pad
    bytes_accessed = (B * D * x_isz
                      + (D * Dm_pad + Dm_pad) * w_isz * grid_i * grid_j
                      + (Dm_pad * Do_pad + Do_pad) * w_isz * grid_i
                      + B * Do_pad * x_isz)

    # TODO(synk): on v5e (128 MiB VMEM, lowest HBM BW), pipeline_mode=pl.Buffered(3) on the
    # w1/w2 specs gives a few-% win when the extra buffer fits the budget.
    out = pl.pallas_call(
        mlp_block_kernel,
        out_shape=jax.ShapeDtypeStruct((B, Do_pad), out_dtype),
        grid_spec=pltpu.PrefetchScalarGridSpec(
            num_scalar_prefetch=0,
            grid=grid,
            in_specs=[
                pl.BlockSpec((tm, D), lambda i, j, k: (i, 0)),    # x (constant over j, k)
                pl.BlockSpec((D, tk), lambda i, j, k: (0, k)),    # w1 chunk streams over k
                pl.BlockSpec((1, tk), lambda i, j, k: (0, k)),    # b1 chunk
                pl.BlockSpec((tk, tn), lambda i, j, k: (k, j)),   # w2 chunk streams over k
                pl.BlockSpec((1, tn), lambda i, j, k: (0, j)),    # b2 tile
            ],
            out_specs=pl.BlockSpec((tm, tn), lambda i, j, k: (i, j)),
            scratch_shapes=[pltpu.VMEM((tm, tn), jnp.float32)],
        ),
        compiler_params=pltpu.CompilerParams(
            dimension_semantics=("parallel", "parallel", "arbitrary"),
            vmem_limit_bytes=vmem_limit),
        cost_estimate=pl.CostEstimate(
            flops=flops, transcendentals=B * Dm_pad * grid_j,
            bytes_accessed=bytes_accessed),
    )(x, w1, b1, w2, b2)

    return out[:, :Do] if Do_pad != Do else out


def make_params(key, input_dim, output_dim, factor=4, dtype=jnp.float32):
    """Deterministic synthetic parameters with the same shapes as the PyTorch module."""
    middle_dim = int(factor * input_dim)
    k1, k2, k3, k4 = jax.random.split(key, 4)
    # Stored as (in, out) so the kernel computes x @ W + b directly.
    w1 = (jax.random.normal(k1, (input_dim, middle_dim), jnp.float32) * 0.02).astype(dtype)
    b1 = (jax.random.normal(k2, (1, middle_dim), jnp.float32) * 0.02).astype(dtype)
    w2 = (jax.random.normal(k3, (middle_dim, output_dim), jnp.float32) * 0.02).astype(dtype)
    b2 = (jax.random.normal(k4, (1, output_dim), jnp.float32) * 0.02).astype(dtype)
    return w1, b1, w2, b2


def mlp_block_ref(x, w1, b1, w2, b2):
    """Plain-JAX reference for correctness checking."""
    h = x @ w1 + b1
    h = 0.5 * h * (1.0 + jax.lax.erf(h * 0.7071067811865476))
    return h @ w2 + b2


if __name__ == "__main__":
    # Small shapes consistent with the module: input_dim=32, factor=4 -> middle=128,
    # output_dim=16, batch=8.
    batch, input_dim, output_dim, factor = 8, 32, 16, 4

    key = jax.random.PRNGKey(0)
    kx, kp = jax.random.split(key)
    x = jax.random.normal(kx, (batch, input_dim), jnp.float32)
    w1, b1, w2, b2 = make_params(kp, input_dim, output_dim, factor)

    out = mlp_block(x, w1, b1, w2, b2)
    out = jax.block_until_ready(out)

    ref = mlp_block_ref(x, w1, b1, w2, b2)
    assert out.shape == (batch, output_dim)
    # f32 path (default) matches the f32 reference tightly; bf16 deployments should use a
    # looser (~1e-2 relative) tolerance.
    assert jnp.allclose(out, ref, atol=1e-5, rtol=1e-5), "mismatch vs JAX reference"

    print("KERNEL_OK")
</pallas_src>

<mosaic_0001>
module attributes {stable_mosaic.version = 11 : i64} {
  func.func @mlp_block_kernel(%arg0: i32, %arg1: i32, %arg2: i32, %arg3: memref<8x32xf32, #tpu.memory_space<vmem>>, %arg4: memref<32x128xf32, #tpu.memory_space<vmem>>, %arg5: memref<1x128xf32, #tpu.memory_space<vmem>>, %arg6: memref<128x128xf32, #tpu.memory_space<vmem>>, %arg7: memref<1x128xf32, #tpu.memory_space<vmem>>, %arg8: memref<8x128xf32, #tpu.memory_space<vmem>>, %arg9: memref<8x128xf32, #tpu.memory_space<vmem>>) attributes {dimension_semantics = [#tpu.dimension_semantics<parallel>, #tpu.dimension_semantics<parallel>, #tpu.dimension_semantics<arbitrary>], iteration_bounds = array<i64: 1, 1, 1>, scalar_prefetch = 0 : i64, scratch_operands = 1 : i64, tpu.core_type = #tpu.core_type<tc>, window_params = [{transform_indices = @transform_0, window_bounds = array<i64: 8, 32>}, {transform_indices = @transform_1, window_bounds = array<i64: 32, 128>}, {transform_indices = @transform_2, window_bounds = array<i64: 1, 128>}, {transform_indices = @transform_3, window_bounds = array<i64: 128, 128>}, {transform_indices = @transform_4, window_bounds = array<i64: 1, 128>}, {transform_indices = @transform_5, window_bounds = array<i64: 8, 128>}]} {
    %c0_i32 = arith.constant 0 : i32
    %0 = arith.cmpi eq, %arg2, %c0_i32 : i32
    %1 = arith.extui %0 : i1 to i32
    %c0_i32_0 = arith.constant 0 : i32
    %2 = arith.cmpi ne, %1, %c0_i32_0 : i32
    scf.if %2 {
      %cst_18 = arith.constant 0.000000e+00 : f32
      %25 = vector.broadcast %cst_18 : f32 to vector<8x128xf32>
      %c0_19 = arith.constant 0 : index
      %c0_20 = arith.constant 0 : index
      %26 = vector.load %arg9[%c0_19, %c0_20] : memref<8x128xf32, #tpu.memory_space<vmem>>, vector<8x128xf32>
      tpu.vector_store %arg9[%c0_19, %c0_20], %25 {strides = array<i32>} : memref<8x128xf32, #tpu.memory_space<vmem>>, vector<8x128xf32>,
    } else {
    }
    %c0 = arith.constant 0 : index
    %c0_1 = arith.constant 0 : index
    %3 = vector.load %arg3[%c0, %c0_1] : memref<8x32xf32, #tpu.memory_space<vmem>>, vector<8x32xf32>
    %c0_2 = arith.constant 0 : index
    %c0_3 = arith.constant 0 : index
    %4 = vector.load %arg4[%c0_2, %c0_3] : memref<32x128xf32, #tpu.memory_space<vmem>>, vector<32x128xf32>
    %cst = arith.constant dense<0.000000e+00> : vector<8x128xf32>
    %5 = tpu.matmul %3, %4, %cst {dimension_numbers = #tpu.dot_dimension_numbers<[1], [0], [0], [1], [0, 0, 1, 1], [], []>} : vector<8x32xf32>, vector<32x128xf32>, vector<8x128xf32> -> vector<8x128xf32>
    %c0_4 = arith.constant 0 : index
    %c0_5 = arith.constant 0 : index
    %6 = vector.load %arg5[%c0_4, %c0_5] : memref<1x128xf32, #tpu.memory_space<vmem>>, vector<1x128xf32>
    %7 = vector.broadcast %6 : vector<1x128xf32> to vector<8x128xf32>
    %8 = arith.addf %5, %7 : vector<8x128xf32>
    %cst_6 = arith.constant 5.000000e-01 : f32
    %9 = vector.broadcast %cst_6 : f32 to vector<8x128xf32>
    %10 = arith.mulf %9, %8 : vector<8x128xf32>
    %cst_7 = arith.constant 0.707106769 : f32
    %11 = vector.broadcast %cst_7 : f32 to vector<8x128xf32>
    %12 = arith.mulf %8, %11 : vector<8x128xf32>
    %13 = math.erf %12 : vector<8x128xf32>
    %cst_8 = arith.constant 1.000000e+00 : f32
    %14 = vector.broadcast %cst_8 : f32 to vector<8x128xf32>
    %15 = arith.addf %14, %13 : vector<8x128xf32>
    %16 = arith.mulf %10, %15 : vector<8x128xf32>
    %c0_9 = arith.constant 0 : index
    %c0_10 = arith.constant 0 : index
    %17 = vector.load %arg9[%c0_9, %c0_10] : memref<8x128xf32, #tpu.memory_space<vmem>>, vector<8x128xf32>
    %c0_11 = arith.constant 0 : index
    %c0_12 = arith.constant 0 : index
    %18 = vector.load %arg6[%c0_11, %c0_12] : memref<128x128xf32, #tpu.memory_space<vmem>>, vector<128x128xf32>
    %cst_13 = arith.constant dense<0.000000e+00> : vector<8x128xf32>
    %19 = tpu.matmul %16, %18, %cst_13 {dimension_numbers = #tpu.dot_dimension_numbers<[1], [0], [0], [1], [0, 0, 1, 1], [], []>} : vector<8x128xf32>, vector<128x128xf32>, vector<8x128xf32> -> vector<8x128xf32>
    %20 = arith.addf %17, %19 : vector<8x128xf32>
    %c0_14 = arith.constant 0 : index
    %c0_15 = arith.constant 0 : index
    %21 = vector.load %arg9[%c0_14, %c0_15] : memref<8x128xf32, #tpu.memory_space<vmem>>, vector<8x128xf32>
    tpu.vector_store %arg9[%c0_14, %c0_15], %20 {strides = array<i32>} : memref<8x128xf32, #tpu.memory_space<vmem>>, vector<8x128xf32>,
    %c0_i32_16 = arith.constant 0 : i32
    %22 = arith.cmpi eq, %arg2, %c0_i32_16 : i32
    %23 = arith.extui %22 : i1 to i32
    %c0_i32_17 = arith.constant 0 : i32
    %24 = arith.cmpi ne, %23, %c0_i32_17 : i32
    scf.if %24 {
      %c0_18 = arith.constant 0 : index
      %c0_19 = arith.constant 0 : index
      %25 = vector.load %arg9[%c0_18, %c0_19] : memref<8x128xf32, #tpu.memory_space<vmem>>, vector<8x128xf32>
      %c0_20 = arith.constant 0 : index
      %c0_21 = arith.constant 0 : index
      %26 = vector.load %arg7[%c0_20, %c0_21] : memref<1x128xf32, #tpu.memory_space<vmem>>, vector<1x128xf32>
      %27 = vector.broadcast %26 : vector<1x128xf32> to vector<8x128xf32>
      %28 = arith.addf %25, %27 : vector<8x128xf32>
      %c0_22 = arith.constant 0 : index
      %c0_23 = arith.constant 0 : index
      %29 = vector.load %arg8[%c0_22, %c0_23] : memref<8x128xf32, #tpu.memory_space<vmem>>, vector<8x128xf32>
      tpu.vector_store %arg8[%c0_22, %c0_23], %28 {strides = array<i32>} : memref<8x128xf32, #tpu.memory_space<vmem>>, vector<8x128xf32>,
    } else {
    }
    return
  }
  func.func @transform_0(%arg0: i32, %arg1: i32, %arg2: i32) -> (i32, i32) {
    %c0_i32 = arith.constant 0 : i32
    %c0_i32_0 = arith.constant 0 : i32
    return %arg0, %c0_i32 : i32, i32
  }
  func.func @transform_1(%arg0: i32, %arg1: i32, %arg2: i32) -> (i32, i32) {
    %c0_i32 = arith.constant 0 : i32
    %c0_i32_0 = arith.constant 0 : i32
    return %c0_i32, %arg2 : i32, i32
  }
  func.func @transform_2(%arg0: i32, %arg1: i32, %arg2: i32) -> (i32, i32) {
    %c0_i32 = arith.constant 0 : i32
    %c0_i32_0 = arith.constant 0 : i32
    return %c0_i32, %arg2 : i32, i32
  }
  func.func @transform_3(%arg0: i32, %arg1: i32, %arg2: i32) -> (i32, i32) {
    %c0_i32 = arith.constant 0 : i32
    return %arg2, %arg1 : i32, i32
  }
  func.func @transform_4(%arg0: i32, %arg1: i32, %arg2: i32) -> (i32, i32) {
    %c0_i32 = arith.constant 0 : i32
    %c0_i32_0 = arith.constant 0 : i32
    return %c0_i32, %arg1 : i32, i32
  }
  func.func @transform_5(%arg0: i32, %arg1: i32, %arg2: i32) -> (i32, i32) {
    %c0_i32 = arith.constant 0 : i32
    return %arg0, %arg1 : i32, i32
  }
}

</mosaic_0001>

<bundles_post_ra>
// kernel: tpu_custom_call.1
= control target key start
LH: loop header
LB: loop body
LE: loop exit
PB: predicated region body
PF: predicated region fallthrough
CT: control target
= control target key end

     0   :  { %10 = vsyncpa [#allocation4], 0  ;;  %s383_s0 = inlined_call_operand.hbm [shape: f32[8,32], index: 0, kind: input, shape index: {}]   ;;  %s384_s1 = inlined_call_operand.hbm [shape: f32[32,128], index: 1, kind: input, shape index: {}]   ;;  %s385_s2 = inlined_call_operand.vmem [shape: f32[1,128], index: 2, kind: input, shape index: {}]   ;;  %s386_s3 = inlined_call_operand.hbm [shape: f32[128,128], index: 3, kind: input, shape index: {}]   ;;  %s387_s4 = inlined_call_operand.vmem [shape: f32[1,128], index: 4, kind: input, shape index: {}]   ;;  %s388_s5 = inlined_call_operand.hbm [shape: f32[8,128], index: 5, kind: output, shape index: {}]  }
   0x1   :  { %11 = vsyncpa [#allocation7], 0  ;;  %s28_s20 = sshll.u32 %s384_s1, 4  ;;  %s29_s20 = int_to_ptr.hbm [resolvable:$true] %s28_s20 }
   0x2   :  { %12 = vsyncpa [#allocation5], 0  ;;  %s329_s21 = smov [#allocation6]   ;;  %s18_s25 = sshll.u32 %s383_s0, 4  ;;  %s19_s25 = int_to_ptr.hbm [resolvable:$true] %s18_s25 }
   0x3   :  { %s30_s22 = sshll.u32 %s329_s21, 4  ;;  %s330_s26 = smov 128   ;;  %s31_s22 = int_to_ptr.vmem [resolvable:$true] %s30_s22 }
   0x4   :  { %s331_s27 = smov 8   ;;  %s332_s28 = smov [#allocation3]  }
   0x5   :  { %36 = dma.hbm_to_vmem [thread:$0]  %s29_s20, 512, %s31_s22, [#allocation7], %s330_s26, %s330_s26, %s331_s27  }
   0x6   :  { %s20_s29 = sshll.u32 %s332_s28, 4  ;;  %s43_s7 = sshll.u32 %s386_s3, 4  ;;  %s21_s29 = int_to_ptr.vmem [resolvable:$true] %s20_s29  ;;  %s44_s7 = int_to_ptr.hbm [resolvable:$true] %s43_s7 }
   0x7   :  { %23 = dma.hbm_to_vmem [thread:$0]  %s19_s25, 128, %s21_s29, [#allocation4]  }
   0x8   :  { %s333_s1 = smov [#allocation8]  }
   0x9   :  { %s45_s8 = sshll.u32 %s333_s1, 4  ;;  %s46_s8 = int_to_ptr.vmem [resolvable:$true] %s45_s8 }
   0xa   :  { %51 = dma.hbm_to_vmem [thread:$0]  %s44_s7, 2048, %s46_s8, [#allocation7], %s330_s26, %s330_s26, %s331_s27  }
   0xb   :  { %323 = dma.done.wait [#allocation4], 128  }
   0xc   :  { %324 = vsyncadd [#allocation4], 4294967168 }
   0xd   :  { %325 = dma.done.wait [#allocation7], 2560  }
   0xe   :  { %326 = vsyncadd [#allocation7], 4294964736  ;;  %v75_v0 = vld [vmem:[#allocation6 + $0x18] sm:$0xff]  ;;  %v74_v1 = vld [vmem:[#allocation6 + $0x10] sm:$0xff]  ;;  %vm80_vm0 = vcmask 261120   ;;  %s334_s10 = smov [#allocation9]  }
   0xf   :  { %96 = vmatpush.msra.mxu0 %v75_v0  ;;  %v73_v2 = vld [vmem:[#allocation6 + $0x8] sm:$0xff]  ;;  %v72_v3 = vld [vmem:[#allocation6] sm:$0xff]  ;;  %v71_v4 = vld [vmem:[#allocation3] sm:$0xff]  ;;  %s202_s11 = sshll.u32 %s334_s10, 4  ;;  %s204_s14 = sshll.u32 %s388_s5, 4  ;;  %s203_s11 = int_to_ptr.vmem [resolvable:$true] %s202_s11  ;;  %s205_s14 = int_to_ptr.hbm [resolvable:$true] %s204_s14 }
  0x10   :  { %v164_v5 = vld [vmem:[#allocation8 + $0x78] sm:$0xff]  ;;  %v163_v6 = vld [vmem:[#allocation8 + $0x70] sm:$0xff]  ;;  %v162_v7 = vld [vmem:[#allocation8 + $0x68] sm:$0xff] }
  0x11   :  { %97 = vmatpush.msra.mxu0 %v74_v1  ;;  %165 = vmatpush.msra.mxu1 %v164_v5  ;;  %v161_v8 = vld [vmem:[#allocation8 + $0x60] sm:$0xff]  ;;  %v223_v9 = vld [vmem:[%s385_s2] ss:$0 sm:$0xff]  ;;  %v159_v11 = vld [vmem:[#allocation8 + $0x50] sm:$0xff] }
  0x12   :  { %v160_v10 = vld [vmem:[#allocation8 + $0x58] sm:$0xff]  ;;  %v158_v13 = vld [vmem:[#allocation8 + $0x48] sm:$0xff]  ;;  %v157_v15 = vld [vmem:[#allocation8 + $0x40] sm:$0xff] }
  0x13   :  { %98 = vmatpush.msra.mxu0 %v73_v2  ;;  %166 = vmatpush.msra.mxu1 %v163_v6  ;;  %v156_v17 = vld [vmem:[#allocation8 + $0x38] sm:$0xff]  ;;  %v155_v19 = vld [vmem:[#allocation8 + $0x30] sm:$0xff]  ;;  %v154_v21 = vld [vmem:[#allocation8 + $0x28] sm:$0xff] }
  0x14   :  { %v153_v24 = vld [vmem:[#allocation8 + $0x20] sm:$0xff]  ;;  %v152_v27 = vld [vmem:[#allocation8 + $0x18] sm:$0xff]  ;;  %v151_v30 = vld [vmem:[#allocation8 + $0x10] sm:$0xff] }
  0x15   :  { %99 = vmatpush.msra.mxu0 %v72_v3  ;;  %167 = vmatpush.msra.mxu1 %v162_v7  ;;  %v150_v33 = vld [vmem:[#allocation8 + $0x8] sm:$0xff]  ;;  %v149_v35 = vld [vmem:[#allocation8] sm:$0xff]  ;;  %v224_v63 = vld [vmem:[%s387_s4] ss:$0 sm:$0xff] }
  0x16   :  { %215 = vmatmul.msk.f32.vlgmr.msra.gmra.mxu0 %vm80_vm0, %v71_v4 }
  0x17   :  { %168 = vmatpush.msra.mxu1 %v161_v8 }
  0x19   :  { %169 = vmatpush.msra.mxu1 %v160_v10 }
  0x1b   :  { %170 = vmatpush.msra.mxu1 %v159_v11 }
  0x1d   :  { %171 = vmatpush.msra.mxu1 %v158_v13 }
  0x1f   :  { %172 = vmatpush.msra.mxu1 %v157_v15 }
  0x21   :  { %173 = vmatpush.msra.mxu1 %v156_v17 }
  0x23   :  { %174 = vmatpush.msra.mxu1 %v155_v19 }
  0x25   :  { %175 = vmatpush.msra.mxu1 %v154_v21 }
  0x27   :  { %176 = vmatpush.msra.mxu1 %v153_v24 }
  0x29   :  { %177 = vmatpush.msra.mxu1 %v152_v27 }
  0x2b   :  { %178 = vmatpush.msra.mxu1 %v151_v30 }
  0x2d   :  { %179 = vmatpush.msra.mxu1 %v150_v33 }
  0x2f   :  { %180 = vmatpush.msra.mxu1 %v149_v35 }
  0x93   :  { %v101_v12 = vpop.f32.mrf.mxu0 }
  0x94   :  { %v102_v14 = vadd.f32 %v223_v9, %v101_v12 }
  0x96   :  { %v105_v16 = vmul.f32 0.70710677, %v102_v14  ;;  %v104_v60 = vmul.f32 0.5, %v102_v14 }
  0x98   :  { %v106_v18 = vmul.f32 %v105_v16, %v105_v16 }
  0x9a   :  { %v107_v20 = vmin.f32 %v106_v18, 16.0 }
  0x9c   :  { %v108_v22 = vmul.f32 2.1237322e-06, %v107_v20  ;;  %v119_v23 = vmul.f32 3.8918573e-05, %v107_v20 }
  0x9e   :  { %v109_v25 = vadd.f32 0.00028619796, %v108_v22  ;;  %v120_v26 = vadd.f32 0.001143296, %v119_v23 }
  0xa0   :  { %v110_v28 = vmul.f32 %v109_v25, %v107_v20  ;;  %v121_v29 = vmul.f32 %v120_v26, %v107_v20 }
  0xa2   :  { %v122_v31 = vadd.f32 0.014752088, %v121_v29  ;;  %v111_v32 = vadd.f32 0.0036580483, %v110_v28 }
  0xa4   :  { %v123_v34 = vmul.f32 %v122_v31, %v107_v20  ;;  %v112_v37 = vmul.f32 %v111_v32, %v107_v20 }
  0xa6   :  { %v124_v36 = vadd.f32 0.112945676, %v123_v34  ;;  %v113_v40 = vadd.f32 0.05243302, %v112_v37 }
  0xa8   :  { %v125_v38 = vmul.f32 %v124_v36, %v107_v20  ;;  %v114_v43 = vmul.f32 %v113_v40, %v107_v20 }
  0xaa   :  { %v126_v39 = vadd.f32 0.4994258, %v125_v38  ;;  %v115_v44 = vadd.f32 0.18741608, %v114_v43 }
  0xac   :  { %v127_v41 = vmul.f32 %v126_v39, %v107_v20  ;;  %v116_v46 = vmul.f32 %v115_v44, %v107_v20 }
  0xae   :  { %v128_v42 = vadd.f32 1.0, %v127_v41  ;;  %v117_v50 = vadd.f32 1.1283791, %v116_v46 }
  0xb0   :  { %225 = vrcp.f32 %v128_v42  ;;  %v140_v49 = vand.u32 2147483648, %v128_v42  ;;  %v138_v52 = vand.u32 2147483647, %v128_v42  ;;  %vm134_vm2 = vweird.f32 %v128_v42 }
  0xb1   :  { %v118_v55 = vmul.f32 %v117_v50, %v105_v16 }
  0xb2   :  { %v141_v54 = vor.u32 1.1754944e-38, %v140_v49  ;;  %vm139_vm4 = vcmp.eq.f32.partialorder %v138_v52, 8.507059e+37 }
  0xb6   :  { %v226_v45 = vpop.eup %225 }
  0xb7   :  { %v130_v47 = vmul.f32 %v226_v45, %v128_v42  ;;  %vm135_vm1 = vweird.f32 %v226_v45 }
  0xb8   :  { %vm136_vm3 = vmor %vm134_vm2, %vm135_vm1 }
  0xb9   :  { %v131_v48 = vsub.f32 1.0, %v130_v47 }
  0xbb   :  { %v132_v51 = vmul.f32 %v226_v45, %v131_v48 }
  0xbd   :  { %v133_v53 = vadd.f32 %v226_v45, %v132_v51 }
  0xbf   :  { %v137_v56 = vsel %vm136_vm3, %v226_v45, %v133_v53 }
  0xc0   :  { %v142_v57 = vsel %vm139_vm4, %v141_v54, %v137_v56 }
  0xc1   :  { %v143_v58 = vmul.f32 %v142_v57, %v118_v55 }
  0xc3   :  { %v216_v59 = vclamps-f32 %v143_v58, 1.0 }
  0xc5   :  { %v146_v61 = vadd.f32 1.0, %v216_v59 }
  0xc7   :  { %v147_v62 = vmul.f32 %v146_v61, %v104_v60 }
  0xc9   :  { %181 = vmatmul.f32.vlgmr.msra.gmra.mxu1 %v147_v62 }
 0x146   :  { %v182_v0 = vpop.f32.mrf.mxu1 }
 0x147   :  { %v195_v1 = vadd.f32 %v224_v63, %v182_v0 }
 0x149   :  { %196 = vst [vmem:[#allocation9] sm:$0xff] %v195_v1 }
 0x14a   :  { %207 = dma.vmem_to_hbm [thread:$0]  %s203_s11, 128, %s205_s14, [#allocation5]  }
 0x14b   :  { %327 = dma.done.wait [#allocation5], 128  }
 0x14c   :  { %328 = vsyncadd [#allocation5], 4294967168 }
 0x14d   :  { %212 = vsyncpa [#allocation4], 1 }
 0x14e   :  { %213 = vsyncpa [#allocation7], 1 }
 0x14f   :  { %214 = vsyncpa [#allocation5], 1 }

</bundles_post_ra>
